<compile_context>
chip_gen: v6e
topology: v6e:2x2x1
jax: 0.10.0
libtpu: 0.0.40
codegen_flags: <defaults>
</compile_context>

<pallas_src>
import functools
import math

import jax
import jax.numpy as jnp
from jax import lax
from jax.experimental import pallas as pl
from jax.experimental.pallas import tpu as pltpu

_LANES = 128  # lane-dense output width (one unmasked vst per row block)


# ---------------------------------------------------------------------------
# Tiling helpers.
# ---------------------------------------------------------------------------
def _pick_tile(dim, preferred=(256, 128, 64, 32, 16, 8)):
    """Largest preferred tile dividing `dim` (256 = full MXU width on v6e/v7x;
    any multiple of 128 is full width on v5e)."""
    for t in preferred:
        if dim % t == 0:
            return t
    # TODO(synk): dims not divisible by 8 produce sub-(8,128) blocks; fine for
    # the toy test below, pad the batch for real runs.
    return dim


def _pick_group(two_n, base, d, budget_bytes):
    """Largest multiple of `base` dividing 2N whose (conservatively
    double-buffered) bf16 (Cg, D) block fits in `budget_bytes`."""
    q = two_n // base
    best = base
    for k in range(1, q + 1):
        if q % k == 0 and 2 * (base * k) * d * 2 <= budget_bytes:
            best = base * k
    return best


def _vmem_capacity_bytes():
    """Per-core VMEM (64 MiB/TC on v7x, 128 MiB on v5e/v6e); conservative
    default if the query is unavailable."""
    try:
        return int(pltpu.get_tpu_info().vmem_capacity_bytes)
    except Exception:
        return 64 * 1024 * 1024


# ---------------------------------------------------------------------------
# Stage 1: fused F.normalize(z, dim=-1) of both views -> (2N, D) bf16.
# ---------------------------------------------------------------------------
def _normalize_kernel(za_ref, zb_ref, zn_ref):
    for half, ref in enumerate((za_ref, zb_ref)):
        zf = ref[...].astype(jnp.float32)                  # (T, D)
        ssq = jnp.sum(zf * zf, axis=-1, keepdims=True)     # (T, 1)
        # x / max(||x||, 1e-12) == x * rsqrt(max(||x||^2, 1e-24)); rsqrt -> EUP
        inv_norm = lax.rsqrt(jnp.maximum(ssq, 1e-24))
        zn_ref[half] = (zf * inv_norm).astype(jnp.bfloat16)


def _normalize_both_bf16(z_a, z_b, tile):
    n, d = z_a.shape
    zn = pl.pallas_call(
        _normalize_kernel,
        grid=(n // tile,),
        in_specs=[pl.BlockSpec((tile, d), lambda i: (i, 0)),
                  pl.BlockSpec((tile, d), lambda i: (i, 0))],
        out_specs=pl.BlockSpec((2, tile, d), lambda i: (0, i, 0)),
        out_shape=jax.ShapeDtypeStruct((2, n, d), jnp.bfloat16),
        compiler_params=pltpu.CompilerParams(dimension_semantics=("parallel",)),
    )(z_a, z_b)
    return zn.reshape(2 * n, d)          # (2, N, D) -> (2N, D): layout-free


# ---------------------------------------------------------------------------
# Stage 2: row-parallel NT-Xent cross-entropy over (resident) column groups.
# ---------------------------------------------------------------------------
def _ntxent_kernel(a_ref, b_ref, out_ref, m_ref, l_ref, pos_ref, *,
                   n, inv_temp, row_tile, col_tile, group, lanes):
    i = pl.program_id(0)                 # row block (parallel)
    g = pl.program_id(1)                 # column group (reduction, innermost)
    last_g = pl.num_programs(1) - 1
    nc = group // col_tile               # MXU chunks per group (static)

    # Fresh running-softmax / positive state for every row block.
    @pl.when(g == 0)
    def _init():
        m_ref[...] = jnp.full((row_tile, 1), -jnp.inf, dtype=jnp.float32)
        l_ref[...] = jnp.zeros((row_tile, 1), dtype=jnp.float32)
        pos_ref[...] = jnp.zeros((row_tile, 1), dtype=jnp.float32)

    a = a_ref[...]                       # (Tr, D) bf16, resident for the g sweep
    row0 = i * row_tile                  # global row offset of this block
    # Row r's positive column is (r + N) mod 2N; Tr | N keeps the partner band
    # contiguous and inside a single column group.
    partner0 = jnp.where(row0 < n, row0 + n, row0 - n)
    # (r - c) difference matrix hoisted out of the chunk loop: the global
    # diagonal tests below become a single compare against a scalar per chunk.
    dmat = (lax.broadcasted_iota(jnp.int32, (row_tile, col_tile), 0)
            - lax.broadcasted_iota(jnp.int32, (row_tile, col_tile), 1))

    def chunk(t, carry):
        m, l, pos = carry
        c_start = pl.multiple_of(t * col_tile, col_tile)
        col0 = g * group + t * col_tile                    # global column offset
        b_blk = b_ref[pl.ds(c_start, col_tile), :]         # (Tc, D) bf16 (VMEM)
        # (Tr, Tc) similarity tile: bf16 MXU matmul, f32 accumulation, both
        # contracting dims on the last axis (no transpose pass).  Kept as a
        # value: no scratch store/reload round-trip.
        s = lax.dot_general(a, b_blk,
                            dimension_numbers=(((1,), (1,)), ((), ())),
                            preferred_element_type=jnp.float32) * inv_temp
        # Self-similarity mask in *global* indices: automatically a no-op on
        # chunks that never touch the diagonal (compare+select is VALU filler
        # under the EUP-bound exp below).
        s = jnp.where(dmat == (col0 - row0), -jnp.inf, s)

        # Positive logit = diagonal of the partner band of this same tile
        # (replaces the deleted third "partner" input and its DMA).  Gated so
        # only chunks intersecting the band pay the masked row-reduce.
        in_band = jnp.logical_and(col0 < partner0 + row_tile,
                                  partner0 < col0 + col_tile)
        pos = pos + lax.cond(
            in_band,
            lambda sv: jnp.sum(jnp.where(dmat == (col0 - partner0), sv, 0.0),
                               axis=-1, keepdims=True),
            lambda sv: jnp.zeros((row_tile, 1), jnp.float32),
            s)

        # Online (flash-style) log-sum-exp update.
        m_new = jnp.maximum(m, jnp.max(s, axis=-1, keepdims=True))
        alpha = jnp.exp(m - m_new)
        l = alpha * l + jnp.sum(jnp.exp(s - m_new), axis=-1, keepdims=True)
        return m_new, l, pos

    m, l, pos = lax.fori_loop(0, nc, chunk,
                              (m_ref[...], l_ref[...], pos_ref[...]))
    m_ref[...] = m
    l_ref[...] = l
    pos_ref[...] = pos

    # Finalize: per-row cross-entropy summed into a lane-dense (1, 128) partial
    # (unmasked vst); the final mean is a trivial reduction in the wrapper.
    @pl.when(g == last_g)
    def _finalize():
        lse = jnp.log(l) + m                               # (Tr, 1)
        out_ref[...] = jnp.full((1, lanes), jnp.sum(lse - pos),
                                dtype=jnp.float32)


def contrastive_loss(z_a, z_b, temperature=0.5, *, row_tile=None, col_tile=None):
    """Pallas TPU implementation of ContrastiveLoss.forward(z_A, z_B)."""
    assert z_a.ndim == 2 and z_a.shape == z_b.shape
    n, d = z_a.shape
    two_n = 2 * n
    inv_temp = 1.0 / float(temperature)     # Python float: no captured consts

    # -- generation-aware VMEM budgeting (64 MiB/TC v7x, 128 MiB v5e/v6e) -----
    vmem_cap = _vmem_capacity_bytes()
    vmem_limit = int(vmem_cap * 0.85)       # explicit, not the 32 MiB default

    # -- tiling ---------------------------------------------------------------
    if row_tile is None:
        row_tile = _pick_tile(n)            # Tr | N: partner rows contiguous
    if col_tile is None:
        col_tile = _pick_tile(two_n)        # Tc | 2N: MXU N-dim (256 preferred)
    assert n % row_tile == 0 and two_n % col_tile == 0
    norm_tile = _pick_tile(n)               # stage-1 tile stays modest

    def _group_for(tr):
        base = tr * col_tile // math.gcd(tr, col_tile)       # lcm, divides 2N
        fixed = 2 * tr * d * 2              # double-buffered (Tr, D) bf16 block
        fixed += 4 * tr * col_tile * 4      # headroom for the (Tr, Tc) f32 value
        return _pick_group(two_n, base, d, max(int(vmem_cap * 0.55) - fixed, 0))

    group = _group_for(row_tile)
    if group < two_n:
        # zn cannot be made fully VMEM-resident: streamed-column HBM traffic
        # scales as 2N / Tr, so trade row-block VMEM for fewer passes.
        for tr in (1024, 512):
            if n % tr == 0 and 2 * tr * d * 2 <= vmem_cap // 8:
                row_tile = tr
                group = _group_for(tr)
                break
        # TODO(synk): a column-group-outer grid would further cut streamed
        # traffic (2N/Cg passes over the row operand); not needed while Cg is
        # large, so the simpler (row, group) order is kept.

    nb_rows = two_n // row_tile      # = 2*(N/Tr): even => balanced megacore split (v7x)
    nb_groups = two_n // group       # == 1 when zn is VMEM-resident (single DMA)

    # -- stage 1: fused normalize of both views into one (2N, D) bf16 buffer --
    zn = _normalize_both_bf16(z_a, z_b, norm_tile)

    # -- stage 2 ---------------------------------------------------------------
    kernel = functools.partial(_ntxent_kernel, n=n, inv_temp=inv_temp,
                               row_tile=row_tile, col_tile=col_tile,
                               group=group, lanes=_LANES)
    b_passes = 1 if nb_groups == 1 else nb_rows
    partial_sums = pl.pallas_call(
        kernel,
        grid=(nb_rows, nb_groups),
        in_specs=[
            pl.BlockSpec((row_tile, d), lambda i, g: (i, 0)),   # row block
            pl.BlockSpec((group, d), lambda i, g: (g, 0)),      # column group
        ],
        out_specs=pl.BlockSpec((1, _LANES), lambda i, g: (i, 0)),
        out_shape=jax.ShapeDtypeStruct((nb_rows, _LANES), jnp.float32),
        scratch_shapes=[
            pltpu.VMEM((row_tile, 1), jnp.float32),   # running row max
            pltpu.VMEM((row_tile, 1), jnp.float32),   # running exp-sum
            pltpu.VMEM((row_tile, 1), jnp.float32),   # positive logits
        ],
        compiler_params=pltpu.CompilerParams(
            dimension_semantics=("parallel", "arbitrary"),
            vmem_limit_bytes=vmem_limit),
        cost_estimate=pl.CostEstimate(
            flops=2 * two_n * two_n * d,
            transcendentals=two_n * two_n,
            bytes_accessed=(1 + b_passes) * two_n * d * 2 + nb_rows * _LANES * 4),
    )(zn, zn)

    # mean over the 2N rows (F.cross_entropy default reduction)
    return jnp.sum(partial_sums[:, 0]) / two_n


# ---------------------------------------------------------------------------
# Pure-JAX references (sanity checks).
# ---------------------------------------------------------------------------
def _reference_loss_f32(z_a, z_b, temperature=0.5):
    """Exact f32 reference of the intended NT-Xent semantics."""
    z = jnp.concatenate([z_a, z_b], axis=0).astype(jnp.float32)
    two_n = z.shape[0]
    n = two_n // 2
    zn = z / jnp.maximum(jnp.linalg.norm(z, axis=-1, keepdims=True), 1e-12)
    sim = (zn @ zn.T) / temperature
    sim_m = jnp.where(jnp.eye(two_n, dtype=bool), -jnp.inf, sim)
    pos_col = jnp.concatenate([jnp.arange(n, 2 * n), jnp.arange(0, n)])
    pos = sim[jnp.arange(two_n), pos_col]
    lse = jax.scipy.special.logsumexp(sim_m, axis=-1)
    return jnp.mean(lse - pos)


def _reference_loss_bf16(z_a, z_b, temperature=0.5):
    """Reference mirroring the kernel's bf16-in / f32-accumulate pipeline."""
    z = jnp.concatenate([z_a, z_b], axis=0).astype(jnp.float32)
    two_n = z.shape[0]
    n = two_n // 2
    ssq = jnp.sum(z * z, axis=-1, keepdims=True)
    zn = (z * lax.rsqrt(jnp.maximum(ssq, 1e-24))).astype(jnp.bfloat16)
    sim = lax.dot_general(zn, zn, dimension_numbers=(((1,), (1,)), ((), ())),
                          preferred_element_type=jnp.float32) * (1.0 / temperature)
    pos_col = jnp.concatenate([jnp.arange(n, 2 * n), jnp.arange(0, n)])
    pos = sim[jnp.arange(two_n), pos_col]
    sim_m = jnp.where(jnp.eye(two_n, dtype=bool), -jnp.inf, sim)
    lse = jax.scipy.special.logsumexp(sim_m, axis=-1)
    return jnp.mean(lse - pos)


if __name__ == "__main__":
    key = jax.random.PRNGKey(0)
    k_a, k_b = jax.random.split(key)
    N, D = 8, 32
    z_A = jax.random.normal(k_a, (N, D), dtype=jnp.float32)
    z_B = jax.random.normal(k_b, (N, D), dtype=jnp.float32)

    loss = contrastive_loss(z_A, z_B, temperature=0.5)
    jax.block_until_ready(loss)

    ref_bf16 = _reference_loss_bf16(z_A, z_B, temperature=0.5)
    ref_f32 = _reference_loss_f32(z_A, z_B, temperature=0.5)
    # Tight check against a reference mirroring the kernel's bf16 matmul,
    # loose check against the exact-f32 math (bf16 logits feed exp()).
    assert jnp.allclose(loss, ref_bf16, atol=2e-3, rtol=2e-3), (loss, ref_bf16)
    assert jnp.allclose(loss, ref_f32, atol=2e-2, rtol=2e-2), (loss, ref_f32)

    print("KERNEL_OK")
</pallas_src>

<mosaic_0001>
module attributes {stable_mosaic.version = 11 : i64} {
  func.func @_normalize_kernel(%arg0: i32, %arg1: memref<8x32xf32, #tpu.memory_space<vmem>>, %arg2: memref<8x32xf32, #tpu.memory_space<vmem>>, %arg3: memref<2x8x32xbf16, #tpu.memory_space<vmem>>) attributes {dimension_semantics = [#tpu.dimension_semantics<parallel>], iteration_bounds = array<i64: 1>, scalar_prefetch = 0 : i64, scratch_operands = 0 : i64, tpu.core_type = #tpu.core_type<tc>, window_params = [{transform_indices = @transform_0, window_bounds = array<i64: 8, 32>}, {transform_indices = @transform_1, window_bounds = array<i64: 8, 32>}, {transform_indices = @transform_2, window_bounds = array<i64: 2, 8, 32>}]} {
    %c0 = arith.constant 0 : index
    %c0_0 = arith.constant 0 : index
    %0 = vector.load %arg1[%c0, %c0_0] : memref<8x32xf32, #tpu.memory_space<vmem>>, vector<8x32xf32>
    %1 = arith.mulf %0, %0 : vector<8x32xf32>
    %cst = arith.constant dense<0.000000e+00> : vector<8xf32>
    %2 = vector.multi_reduction <add>, %1, %cst [1] : vector<8x32xf32> to vector<8xf32>
    %3 = vector.shape_cast %2 : vector<8xf32> to vector<8x1xf32>
    %cst_1 = arith.constant 1.000000e-24 : f32
    %4 = vector.broadcast %cst_1 : f32 to vector<8x1xf32>
    %5 = arith.maximumf %3, %4 : vector<8x1xf32>
    %6 = math.rsqrt %5 : vector<8x1xf32>
    %7 = vector.broadcast %6 : vector<8x1xf32> to vector<8x32xf32>
    %8 = arith.mulf %0, %7 : vector<8x32xf32>
    %9 = arith.truncf %8 : vector<8x32xf32> to vector<8x32xbf16>
    %c0_2 = arith.constant 0 : index
    %c0_3 = arith.constant 0 : index
    %c0_4 = arith.constant 0 : index
    %10 = vector.load %arg3[%c0_2, %c0_3, %c0_4] : memref<2x8x32xbf16, #tpu.memory_space<vmem>>, vector<1x8x32xbf16>
    %11 = vector.shape_cast %10 : vector<1x8x32xbf16> to vector<8x32xbf16>
    %12 = vector.shape_cast %9 : vector<8x32xbf16> to vector<1x8x32xbf16>
    tpu.vector_store %arg3[%c0_2, %c0_3, %c0_4], %12 {strides = array<i32>} : memref<2x8x32xbf16, #tpu.memory_space<vmem>>, vector<1x8x32xbf16>,
    %c0_5 = arith.constant 0 : index
    %c0_6 = arith.constant 0 : index
    %13 = vector.load %arg2[%c0_5, %c0_6] : memref<8x32xf32, #tpu.memory_space<vmem>>, vector<8x32xf32>
    %14 = arith.mulf %13, %13 : vector<8x32xf32>
    %cst_7 = arith.constant dense<0.000000e+00> : vector<8xf32>
    %15 = vector.multi_reduction <add>, %14, %cst_7 [1] : vector<8x32xf32> to vector<8xf32>
    %16 = vector.shape_cast %15 : vector<8xf32> to vector<8x1xf32>
    %cst_8 = arith.constant 1.000000e-24 : f32
    %17 = vector.broadcast %cst_8 : f32 to vector<8x1xf32>
    %18 = arith.maximumf %16, %17 : vector<8x1xf32>
    %19 = math.rsqrt %18 : vector<8x1xf32>
    %20 = vector.broadcast %19 : vector<8x1xf32> to vector<8x32xf32>
    %21 = arith.mulf %13, %20 : vector<8x32xf32>
    %22 = arith.truncf %21 : vector<8x32xf32> to vector<8x32xbf16>
    %c1 = arith.constant 1 : index
    %c0_9 = arith.constant 0 : index
    %c0_10 = arith.constant 0 : index
    %23 = vector.load %arg3[%c1, %c0_9, %c0_10] : memref<2x8x32xbf16, #tpu.memory_space<vmem>>, vector<1x8x32xbf16>
    %24 = vector.shape_cast %23 : vector<1x8x32xbf16> to vector<8x32xbf16>
    %25 = vector.shape_cast %22 : vector<8x32xbf16> to vector<1x8x32xbf16>
    tpu.vector_store %arg3[%c1, %c0_9, %c0_10], %25 {strides = array<i32>} : memref<2x8x32xbf16, #tpu.memory_space<vmem>>, vector<1x8x32xbf16>,
    return
  }
  func.func @transform_0(%arg0: i32) -> (i32, i32) {
    %c0_i32 = arith.constant 0 : i32
    %c0_i32_0 = arith.constant 0 : i32
    return %arg0, %c0_i32 : i32, i32
  }
  func.func @transform_1(%arg0: i32) -> (i32, i32) {
    %c0_i32 = arith.constant 0 : i32
    %c0_i32_0 = arith.constant 0 : i32
    return %arg0, %c0_i32 : i32, i32
  }
  func.func @transform_2(%arg0: i32) -> (i32, i32, i32) {
    %c0_i32 = arith.constant 0 : i32
    %c0_i32_0 = arith.constant 0 : i32
    %c0_i32_1 = arith.constant 0 : i32
    return %c0_i32, %arg0, %c0_i32_0 : i32, i32, i32
  }
}

</mosaic_0001>

<bundles_post_ra>
// kernel: tpu_custom_call.1
= control target key start
LH: loop header
LB: loop body
LE: loop exit
PB: predicated region body
PF: predicated region fallthrough
CT: control target
= control target key end

     0   :  { %7 = vsyncpa [#allocation3], 0  ;;  %s181_s0 = inlined_call_operand.hbm [shape: f32[8,32], index: 0, kind: input, shape index: {}]   ;;  %s182_s1 = inlined_call_operand.hbm [shape: f32[8,32], index: 1, kind: input, shape index: {}]   ;;  %s183_s2 = inlined_call_operand.hbm [shape: bf16[2,8,32], index: 2, kind: output, shape index: {}]  }
   0x1   :  { %8 = vsyncpa [#allocation6], 0 }
   0x2   :  { %9 = vsyncpa [#allocation4], 0  ;;  %s152_s9 = smov [#allocation2]   ;;  %s153_s11 = smov [#allocation5]  }
   0x3   :  { %s16_s10 = sshll.u32 %s152_s9, 4  ;;  %s26_s12 = sshll.u32 %s153_s11, 4  ;;  %s17_s10 = int_to_ptr.vmem [resolvable:$true] %s16_s10  ;;  %s27_s12 = int_to_ptr.vmem [resolvable:$true] %s26_s12 }
   0x4   :  { %s94_s13 = scalar_lea.vmem %s17_s10, 128  ;;  %p99_p1 = scmp.lt.s32.totalorder %s17_s10, %s17_s10 }
   0x5   :  { %p95_p0 = scmp.ne.s32.totalorder %s17_s10, %s94_s13  ;;  %p100_p2 = scmp.lt.s32.totalorder %s94_s13, %s94_s13 }
   0x7   :  { %p101_p3 = por %p100_p2, %p99_p1 }
   0x9   :  { %p102_p4 = pnand %p101_p3, %p95_p0 }
   0xb   :  { %105 = shalt.err (!%p102_p4)
}
   0xc   :  { %19 = dma.hbm_to_vmem [thread:$0]  %s181_s0, 128, %s17_s10, [#allocation3]  }
   0xd   :  { %s114_s16 = scalar_lea.vmem %s27_s12, 128  ;;  %p119_p6 = scmp.lt.s32.totalorder %s27_s12, %s27_s12 }
   0xe   :  { %p115_p5 = scmp.ne.s32.totalorder %s27_s12, %s114_s16  ;;  %p120_p7 = scmp.lt.s32.totalorder %s114_s16, %s114_s16 }
  0x10   :  { %p121_p8 = por %p120_p7, %p119_p6 }
  0x12   :  { %p122_p9 = pnand %p121_p8, %p115_p5 }
  0x14   :  { %125 = shalt.err (!%p122_p9)
}
  0x15   :  { %29 = dma.hbm_to_vmem [thread:$0]  %s182_s1, 128, %s27_s12, [#allocation6]  }
  0x16   :  { %146 = dma.done.wait [#allocation3], 128  }
  0x17   :  { %147 = vsyncadd [#allocation3], 4294967168 }
  0x18   :  { %148 = dma.done.wait [#allocation6], 128  }
  0x19   :  { %149 = vsyncadd [#allocation6], 4294967168  ;;  %v36_v0 = vld [vmem:[#allocation2] sm:$0xff]  ;;  %vm38_vm0 = vcmask 261120   ;;  %v48_v1 = vld [vmem:[#allocation5] sm:$0xff]  ;;  %vm46_vm1 = vcmask 257024  }
  0x1a   :  { %v37_v2 = vmul.f32 %v36_v0, %v36_v0  ;;  %v49_v3 = vmul.f32 %v48_v1, %v48_v1  ;;  %s154_s0 = smov [#allocation7]  }
  0x1b   :  { %s64_s1 = sshll.u32 %s154_s0, 4  ;;  %s65_s1 = int_to_ptr.vmem [resolvable:$true] %s64_s1 }
  0x1c   :  { %v39_v4 = vsel %vm38_vm0, %v37_v2, 0.0  ;;  %v50_v5 = vsel %vm38_vm0, %v49_v3, 0.0  ;;  %s126_s19 = scalar_lea.vmem %s65_s1, 128  ;;  %p131_p11 = scmp.lt.s32.totalorder %s65_s1, %s65_s1 }
  0x1d   :  { %40 = vadd.xlane.f32.xlu0 %v39_v4  ;;  %p127_p10 = scmp.ne.s32.totalorder %s65_s1, %s126_s19  ;;  %p132_p12 = scmp.lt.s32.totalorder %s126_s19, %s126_s19 }
  0x1f   :  { %p133_p13 = por %p132_p12, %p131_p11 }
  0x21   :  { %51 = vadd.xlane.f32.xlu0 %v50_v5  ;;  %p134_p0 = pnand %p133_p13, %p127_p10 }
  0xa6   :  { %v41_v6 = vpop.xlane.xlu0 %40 }
  0xa7   :  { %v42_v7 = vmax.f32 %v41_v6, 1e-24 }
  0xa9   :  { %82 = vrsqrt.f32 %v42_v7 }
  0xaa   :  { %v52_v8 = vpop.xlane.xlu0 %51 }
  0xab   :  { %v53_v9 = vmax.f32 %v52_v8, 1e-24 }
  0xad   :  { %84 = vrsqrt.f32 %v53_v9 }
  0xb6   :  { %v83_v10 = vpop.eup %82 }
  0xb7   :  { %v44_v11 = vmul.f32 %v83_v10, %v36_v0 }
  0xb9   :  { %v45_v12 = vpack.c.bf16 %v44_v11, %v44_v11 }
  0xba   :  { %v85_v13 = vpop.eup %84 }
  0xbb   :  { %47 = vst.msk [vmem:[#allocation7] sm:$0xf] %vm46_vm1, %v45_v12  ;;  %v55_v14 = vmul.f32 %v85_v13, %v48_v1 }
  0xbd   :  { %v56_v15 = vpack.c.bf16 %v55_v14, %v55_v14 }
  0xbf   :  { %58 = vst.msk [vmem:[#allocation7 + $0x4] sm:$0xf] %vm46_vm1, %v56_v15 }
  0xc0   :  { %137 = shalt.err (!%p134_p0)
}
  0xc1   :  { %s155_s20 = smov 64   ;;  %s156_s21 = smov 4  }
  0xc2   :  { %70 = dma.vmem_to_hbm [thread:$0]  %s65_s1, 128, %s183_s2, [#allocation4], %s155_s20, %s155_s20, %s156_s21  }
  0xc3   :  { %150 = dma.done.wait [#allocation4], 128  }
  0xc4   :  { %151 = vsyncadd [#allocation4], 4294967168 }
  0xc5   :  { %74 = vsyncpa [#allocation3], 1 }
  0xc6   :  { %75 = vsyncpa [#allocation6], 1 }
  0xc7   :  { %76 = vsyncpa [#allocation4], 1 }

</bundles_post_ra>
